<compile_context>
chip_gen: v5e
topology: v5e:2x2
jax: 0.10.0
libtpu: 0.0.40
codegen_flags: <defaults>
</compile_context>

<pallas_src>
import functools

import jax
import jax.numpy as jnp
from jax.experimental import pallas as pl
from jax.experimental.pallas import tpu as pltpu

_BN_EPS = 1e-5
EXPANSION = 4          # Block1D.expansion
_LANE = 128            # TPU lane width
_SUB = 16              # bf16 sublane granule


# ----------------------------------------------------------------------------
# Helpers: VMEM-aware tile targets, tiling, rounding
# ----------------------------------------------------------------------------
def _round_up(x, m):
    return (x + m - 1) // m * m


def _cdiv(a, b):
    return -(-a // b)


@functools.lru_cache(maxsize=1)
def _hw_config():
    """(tm, tn, tk, vmem_limit_bytes): tiles sized by VMEM, not the MXU tile."""
    vmem_cap = 128 * 1024 * 1024
    try:
        vmem_cap = int(pltpu.get_tpu_info().vmem_capacity_bytes)
    except Exception:
        pass
    tm, tn, tk = 1024, 512, 512          # ~9-11 MiB working set (fits v7x 32 MiB scoped)
    if vmem_cap >= 100 * 1024 * 1024:    # v5e / v6e: 128 MiB VMEM -> wider Cout tiles
        tn = 1024                        # activation strip re-read 2x fewer times
    vmem_limit = max(16 * 1024 * 1024, min(vmem_cap // 2, 64 * 1024 * 1024))
    return tm, tn, tk, vmem_limit


def _tiling(dim, target, granule):
    """(tile, padded_dim): tile % granule == 0 and padded_dim % tile == 0."""
    d = _round_up(max(dim, 1), granule)
    if d <= target:
        return d, d
    ntiles = _cdiv(d, target)
    tile = _round_up(_cdiv(d, ntiles), granule)
    return tile, tile * ntiles


# ----------------------------------------------------------------------------
# Fused tiled matmul + folded-BN (+ residual) (+ ReLU)  -> 1x1 convs, FC layer
# ----------------------------------------------------------------------------
def _fused_matmul_bn_kernel(*refs, has_res: bool, relu: bool):
    # refs = (x, w, scale, bias, [residual], out, acc_scratch)
    x_ref, w_ref, s_ref, b_ref = refs[:4]
    res_ref = refs[4] if has_res else None
    o_ref, acc_ref = refs[-2], refs[-1]

    @pl.when(pl.program_id(2) == 0)
    def _init():
        acc_ref[...] = jnp.zeros_like(acc_ref)

    acc_ref[...] += jnp.dot(x_ref[...], w_ref[...],
                            preferred_element_type=jnp.float32)

    @pl.when(pl.program_id(2) == pl.num_programs(2) - 1)
    def _finalize():
        acc = acc_ref[...] * s_ref[...] + b_ref[...]
        if has_res:
            acc = acc + res_ref[...].astype(jnp.float32)
        if relu:
            acc = jnp.maximum(acc, 0.0)
        o_ref[...] = acc.astype(o_ref.dtype)


def fused_matmul_bn(x, w, scale, bias, residual=None, relu=True,
                    out_dtype=jnp.bfloat16):
    """out = [relu]((x @ w) * scale + bias [+ residual]).

    x: (M, K), w: (K, N), scale/bias: (N,).  K and N are stored pre-padded to
    128 lanes, so only M may need a small pad to the tile granule.
    """
    M, Kc = x.shape
    kw, Nc = w.shape
    assert Kc == kw, (Kc, kw)

    tm_t, tn_t, tk_t, vmem_limit = _hw_config()
    tm, Mp = _tiling(M, tm_t, _SUB)
    tn, Np = _tiling(Nc, tn_t, _LANE)
    tk, Kp = _tiling(Kc, tk_t, _LANE)

    xp = x.astype(jnp.bfloat16)
    if Mp != M or Kp != Kc:
        xp = jnp.pad(xp, ((0, Mp - M), (0, Kp - Kc)))
    wp = w.astype(jnp.bfloat16)
    if Kp != Kc or Np != Nc:
        wp = jnp.pad(wp, ((0, Kp - Kc), (0, Np - Nc)))
    sp = scale.astype(jnp.float32).reshape(1, -1)
    bp = bias.astype(jnp.float32).reshape(1, -1)
    if Np != Nc:
        sp = jnp.pad(sp, ((0, 0), (0, Np - Nc)))
        bp = jnp.pad(bp, ((0, 0), (0, Np - Nc)))

    inputs = [xp, wp, sp, bp]
    in_specs = [
        pl.BlockSpec((tm, tk), lambda i, j, k: (i, k)),
        pl.BlockSpec((tk, tn), lambda i, j, k: (k, j)),
        pl.BlockSpec((1, tn), lambda i, j, k: (0, j)),
        pl.BlockSpec((1, tn), lambda i, j, k: (0, j)),
    ]
    if residual is not None:
        rp = residual.astype(jnp.bfloat16)
        if Mp != M or Np != Nc:
            rp = jnp.pad(rp, ((0, Mp - M), (0, Np - Nc)))
        inputs.append(rp)
        in_specs.append(pl.BlockSpec((tm, tn), lambda i, j, k: (i, j)))

    flops = 2 * Mp * Kp * Np
    bytes_acc = 2 * (Mp * Kp + Kp * Np
                     + Mp * Np * (2 if residual is not None else 1))

    kernel = functools.partial(_fused_matmul_bn_kernel,
                               has_res=residual is not None, relu=relu)
    out = pl.pallas_call(
        kernel,
        out_shape=jax.ShapeDtypeStruct((Mp, Np), out_dtype),
        grid=(Mp // tm, Np // tn, Kp // tk),
        in_specs=in_specs,
        out_specs=pl.BlockSpec((tm, tn), lambda i, j, k: (i, j)),
        scratch_shapes=[pltpu.VMEM((tm, tn), jnp.float32)],
        compiler_params=pltpu.CompilerParams(
            dimension_semantics=("parallel", "parallel", "arbitrary"),
            vmem_limit_bytes=vmem_limit,
        ),
        cost_estimate=pl.CostEstimate(flops=flops, transcendentals=0,
                                      bytes_accessed=bytes_acc),
    )(*inputs)
    if Mp != M or Np != Nc:
        out = out[:M, :Nc]
    return out


# ----------------------------------------------------------------------------
# k-tap Conv1d + folded-BN (+ReLU): taps summed in-kernel, no im2col expansion
# ----------------------------------------------------------------------------
def _conv_tap_kernel(x_ref, w_ref, s_ref, b_ref, o_ref, acc_ref,
                     *, tap_offsets, l_out: int, relu: bool):
    @pl.when(pl.program_id(2) == 0)
    def _init():
        acc_ref[...] = jnp.zeros_like(acc_ref)

    # Static unit-stride windows of the resident activation strip, one matmul
    # per tap, accumulated in f32.
    for t, off in enumerate(tap_offsets):
        acc_ref[...] += jnp.dot(x_ref[0, off:off + l_out, :], w_ref[t],
                                preferred_element_type=jnp.float32)

    @pl.when(pl.program_id(2) == pl.num_programs(2) - 1)
    def _finalize():
        y = acc_ref[...] * s_ref[...] + b_ref[...]
        if relu:
            y = jnp.maximum(y, 0.0)
        o_ref[0] = y.astype(o_ref.dtype)


def conv_taps_bn_act(x, w3, scale, bias, stride, padding, relu=True):
    """k-tap Conv1d + BN (+ReLU).

    x:  (N, L, Cin_pad) channels-last bf16 activation.
    w3: (k, Cin_pad, Cout_pad) bf16 weights.
    For stride > 1 the padded activation is re-packed into `stride` phase
    streams (one extra activation pass) so every in-kernel tap slice is a
    static, unit-stride window — no k-times im2col HBM expansion.
    """
    N, L, Cin = x.shape
    k, _, Cout = w3.shape
    l_out = (L + 2 * padding - k) // stride + 1
    xp = jnp.pad(x, ((0, 0), (padding, padding), (0, 0))) if padding else x

    Ls = l_out + (k - 1) // stride
    if stride == 1:
        xcat = xp                                   # length == L + 2*padding == Ls
        offsets = tuple(range(k))
    else:
        phases = []
        for r in range(stride):
            ph = xp[:, r::stride, :]
            if ph.shape[1] < Ls:
                ph = jnp.pad(ph, ((0, 0), (0, Ls - ph.shape[1]), (0, 0)))
            else:
                ph = ph[:, :Ls, :]
            phases.append(ph)
        xcat = jnp.concatenate(phases, axis=1)
        offsets = tuple((t // stride) + (t % stride) * Ls for t in range(k))

    _, tn_t, tk_t, vmem_limit = _hw_config()
    tn, Np = _tiling(Cout, tn_t, _LANE)             # Cout pre-padded -> Np == Cout
    tkc, Kp = _tiling(Cin, tk_t, _LANE)             # Cin  pre-padded -> Kp == Cin
    sp = scale.astype(jnp.float32).reshape(1, -1)
    bp = bias.astype(jnp.float32).reshape(1, -1)
    lcat = xcat.shape[1]

    flops = 2 * N * l_out * k * Kp * Np
    bytes_acc = 2 * (N * lcat * Kp + k * Kp * Np + N * l_out * Np)

    kernel = functools.partial(_conv_tap_kernel, tap_offsets=offsets,
                               l_out=l_out, relu=relu)
    return pl.pallas_call(
        kernel,
        out_shape=jax.ShapeDtypeStruct((N, l_out, Np), jnp.bfloat16),
        grid=(N, Np // tn, Kp // tkc),
        in_specs=[
            pl.BlockSpec((1, lcat, tkc), lambda n, j, c: (n, 0, c)),
            pl.BlockSpec((k, tkc, tn), lambda n, j, c: (0, c, j)),
            pl.BlockSpec((1, tn), lambda n, j, c: (0, j)),
            pl.BlockSpec((1, tn), lambda n, j, c: (0, j)),
        ],
        out_specs=pl.BlockSpec((1, l_out, tn), lambda n, j, c: (n, 0, j)),
        scratch_shapes=[pltpu.VMEM((l_out, tn), jnp.float32)],
        compiler_params=pltpu.CompilerParams(
            dimension_semantics=("parallel", "parallel", "arbitrary"),
            vmem_limit_bytes=vmem_limit,
        ),
        cost_estimate=pl.CostEstimate(flops=flops, transcendentals=0,
                                      bytes_accessed=bytes_acc),
    )(xcat.astype(jnp.bfloat16), w3.astype(jnp.bfloat16), sp, bp)


# ----------------------------------------------------------------------------
# 1x1 Conv1d (+BN, +residual, +ReLU) via the fused matmul kernel
# ----------------------------------------------------------------------------
def conv1x1_bn_act(x, wmat, scale, bias, stride=1, relu=True, residual=None):
    """x: (N, L, Cin_pad); wmat: (Cin_pad, Cout_pad); residual: (N, Lout, Cout_pad)."""
    if stride > 1:
        x = x[:, ::stride, :]
    N, L, Cin = x.shape
    Cout = wmat.shape[1]
    res2 = None if residual is None else residual.reshape(N * L, Cout)
    y = fused_matmul_bn(x.reshape(N * L, Cin), wmat, scale, bias,
                        residual=res2, relu=relu)
    return y.reshape(N, L, Cout)


# ----------------------------------------------------------------------------
# AdaptiveAvgPool1d(1): bounded blocks, parallel C axis, arbitrary L reduction
# ----------------------------------------------------------------------------
def _pool_kernel(x_ref, o_ref, acc_ref, *, inv_l: float):
    @pl.when(pl.program_id(1) == 0)
    def _init():
        acc_ref[...] = jnp.zeros_like(acc_ref)

    # TODO(synk): L reduction could use an MXU ones-dot; pooling is a
    # negligible fraction of total HBM traffic so the f32 VPU sum is kept.
    acc_ref[...] += jnp.sum(x_ref[...].astype(jnp.float32), axis=1)

    @pl.when(pl.program_id(1) == pl.num_programs(1) - 1)
    def _finalize():
        o_ref[...] = acc_ref[...] * inv_l


def avg_pool_1d(x):
    """(N, L, C_pad) -> (N, C_pad) float32."""
    N, L, C = x.shape
    _, tn_t, _, vmem_limit = _hw_config()
    tc, Cp = _tiling(C, min(tn_t, 512), _LANE)      # C pre-padded -> Cp == C
    tl, Lp = _tiling(L, 512, _SUB)
    if Lp != L:
        x = jnp.pad(x, ((0, 0), (0, Lp - L), (0, 0)))   # zeros don't affect the sum

    kernel = functools.partial(_pool_kernel, inv_l=1.0 / float(L))
    return pl.pallas_call(
        kernel,
        out_shape=jax.ShapeDtypeStruct((N, Cp), jnp.float32),
        grid=(Cp // tc, Lp // tl),
        in_specs=[pl.BlockSpec((N, tl, tc), lambda c, l: (0, l, c))],
        out_specs=pl.BlockSpec((N, tc), lambda c, l: (0, c)),
        scratch_shapes=[pltpu.VMEM((N, tc), jnp.float32)],
        compiler_params=pltpu.CompilerParams(
            dimension_semantics=("parallel", "arbitrary"),
            vmem_limit_bytes=vmem_limit,
        ),
        cost_estimate=pl.CostEstimate(flops=N * Lp * Cp, transcendentals=0,
                                      bytes_accessed=2 * N * Lp * Cp + 4 * N * Cp),
    )(x.astype(jnp.bfloat16))


# ----------------------------------------------------------------------------
# Parameter init (deterministic, fresh-module BN semantics, pre-padded layouts)
# ----------------------------------------------------------------------------
def _bn_folded(c_true, c_pad):
    gamma = jnp.ones((c_true,), jnp.float32)
    beta = jnp.zeros((c_true,), jnp.float32)
    mean = jnp.zeros((c_true,), jnp.float32)
    var = jnp.ones((c_true,), jnp.float32)
    scale = gamma / jnp.sqrt(var + _BN_EPS)
    bias = beta - mean * scale
    # Zero padding of the bias keeps padded output lanes exactly zero.
    return (jnp.pad(scale, (0, c_pad - c_true)),
            jnp.pad(bias, (0, c_pad - c_true)))


def _conv_w(key, cout, cin, k):
    # TODO(synk): PyTorch uses kaiming init; a deterministic gaussian suffices here.
    return 0.05 * jax.random.normal(key, (cout, cin, k), jnp.float32)


def _make_wmat(w, cin_pad, cout_pad):
    # 1x1 conv: (Cout, Cin, 1) -> (Cin_pad, Cout_pad) bf16
    cout, cin, _ = w.shape
    wt = jnp.transpose(w[:, :, 0], (1, 0))
    return jnp.pad(wt, ((0, cin_pad - cin), (0, cout_pad - cout))).astype(jnp.bfloat16)


def _make_w3(w, cin_pad, cout_pad):
    # k-tap conv: (Cout, Cin, K) -> (K, Cin_pad, Cout_pad) bf16
    cout, cin, _ = w.shape
    wt = jnp.transpose(w, (2, 1, 0))
    return jnp.pad(wt, ((0, 0), (0, cin_pad - cin),
                        (0, cout_pad - cout))).astype(jnp.bfloat16)


def init_bottleneck(key, in_true, in_pad, mid, stride, downsample):
    mid_pad = _round_up(mid, _LANE)
    out_true = mid * EXPANSION
    out_pad = _round_up(out_true, _LANE)
    ks = jax.random.split(key, 4)
    p = {"stride": stride}
    p["wmat1"] = _make_wmat(_conv_w(ks[0], mid, in_true, 1), in_pad, mid_pad)
    p["s1"], p["b1"] = _bn_folded(mid, mid_pad)
    p["w3_2"] = _make_w3(_conv_w(ks[1], mid, mid, 3), mid_pad, mid_pad)
    p["s2"], p["b2"] = _bn_folded(mid, mid_pad)
    p["wmat3"] = _make_wmat(_conv_w(ks[2], out_true, mid, 1), mid_pad, out_pad)
    p["s3"], p["b3"] = _bn_folded(out_true, out_pad)
    if downsample:
        p["ds_wmat"] = _make_wmat(_conv_w(ks[3], out_true, in_true, 1),
                                  in_pad, out_pad)
        p["ds_s"], p["ds_b"] = _bn_folded(out_true, out_pad)
    return p


def init_resnet1d(key, layers, input_channels, num_classes):
    keys = iter(jax.random.split(key, 64))
    params = {"num_classes": num_classes,
              "in_channels_pad": _round_up(input_channels, _LANE)}

    c1_pad = _round_up(64, _LANE)
    params["conv1_w3"] = _make_w3(_conv_w(next(keys), 64, input_channels, 7),
                                  params["in_channels_pad"], c1_pad)
    params["bn1_s"], params["bn1_b"] = _bn_folded(64, c1_pad)

    in_true, in_pad = 64, c1_pad
    stages = []
    for mid, n_blocks, stride in zip((64, 128, 256, 512), layers, (1, 2, 2, 2)):
        blocks = []
        needs_ds = stride != 1 or in_true != mid * EXPANSION
        blocks.append(init_bottleneck(next(keys), in_true, in_pad, mid,
                                      stride, needs_ds))
        in_true, in_pad = mid * EXPANSION, _round_up(mid * EXPANSION, _LANE)
        for _ in range(1, n_blocks):
            blocks.append(init_bottleneck(next(keys), in_true, in_pad, mid,
                                          1, False))
        stages.append(blocks)
    params["stages"] = stages

    fc_in, fc_in_pad = 512 * EXPANSION, in_pad
    nc_pad = _round_up(num_classes, _LANE)
    w_fc = 0.05 * jax.random.normal(next(keys), (fc_in, num_classes), jnp.float32)
    params["fc_w"] = jnp.pad(w_fc, ((0, fc_in_pad - fc_in),
                                    (0, nc_pad - num_classes))).astype(jnp.bfloat16)
    params["fc_b"] = jnp.zeros((nc_pad,), jnp.float32)
    params["fc_s"] = jnp.ones((nc_pad,), jnp.float32)
    return params


# ----------------------------------------------------------------------------
# Forward pass
# ----------------------------------------------------------------------------
def bottleneck_forward(p, x):
    # TODO(synk): fuse the whole bottleneck (conv1->conv2->conv3 + residual)
    # into one pallas_call with block weights resident in VMEM.
    identity = x
    if "ds_wmat" in p:
        identity = conv1x1_bn_act(x, p["ds_wmat"], p["ds_s"], p["ds_b"],
                                  stride=p["stride"], relu=False)
    out = conv1x1_bn_act(x, p["wmat1"], p["s1"], p["b1"], relu=True)
    out = conv_taps_bn_act(out, p["w3_2"], p["s2"], p["b2"],
                           stride=p["stride"], padding=1, relu=True)
    # conv3 + bn3 + residual add + ReLU fused in one pallas_call.
    out = conv1x1_bn_act(out, p["wmat3"], p["s3"], p["b3"], relu=True,
                         residual=identity)
    return out


def resnet1d_forward(params, x_ncl):
    # PyTorch Conv1d layout (N, C, L) -> channels-last (N, L, C), lane-dense.
    n, c_in, _ = x_ncl.shape
    x = jnp.transpose(x_ncl, (0, 2, 1)).astype(jnp.bfloat16)
    c_pad = params["in_channels_pad"]
    if c_pad != c_in:
        x = jnp.pad(x, ((0, 0), (0, 0), (0, c_pad - c_in)))
    # Stem: 7-tap stride-2 conv, taps folded in-kernel (no im2col).
    x = conv_taps_bn_act(x, params["conv1_w3"], params["bn1_s"], params["bn1_b"],
                         stride=2, padding=3, relu=True)
    for stage in params["stages"]:
        for blk in stage:
            x = bottleneck_forward(blk, x)
    pooled = avg_pool_1d(x)                                   # (N, 2048) f32
    logits = fused_matmul_bn(pooled, params["fc_w"], params["fc_s"],
                             params["fc_b"], relu=False, out_dtype=jnp.float32)
    return logits[:, :params["num_classes"]]


# ----------------------------------------------------------------------------
if __name__ == "__main__":
    key = jax.random.PRNGKey(0)
    k_par, k_in = jax.random.split(key)

    layers = [1, 1, 1, 1]        # small ResNet1D
    input_channels = 4
    num_classes = 10
    batch, seq_len = 2, 16

    params = init_resnet1d(k_par, layers, input_channels, num_classes)
    x = jax.random.normal(k_in, (batch, input_channels, seq_len), jnp.float32)

    out = resnet1d_forward(params, x)
    out = jax.block_until_ready(out)

    assert out.shape == (batch, num_classes), out.shape
    assert bool(jnp.all(jnp.isfinite(out)))
    print("KERNEL_OK")
</pallas_src>

<mosaic_0001>
module attributes {stable_mosaic.version = 11 : i64} {
  func.func @_conv_tap_kernel(%arg0: i32, %arg1: i32, %arg2: i32, %arg3: memref<1x22x128xbf16, #tpu.memory_space<vmem>>, %arg4: memref<7x128x128xbf16, #tpu.memory_space<vmem>>, %arg5: memref<1x128xf32, #tpu.memory_space<vmem>>, %arg6: memref<1x128xf32, #tpu.memory_space<vmem>>, %arg7: memref<1x8x128xbf16, #tpu.memory_space<vmem>>, %arg8: memref<8x128xf32, #tpu.memory_space<vmem>>) attributes {dimension_semantics = [#tpu.dimension_semantics<parallel>, #tpu.dimension_semantics<parallel>, #tpu.dimension_semantics<arbitrary>], iteration_bounds = array<i64: 2, 1, 1>, scalar_prefetch = 0 : i64, scratch_operands = 1 : i64, tpu.core_type = #tpu.core_type<tc>, window_params = [{transform_indices = @transform_0, window_bounds = array<i64: 1, 22, 128>}, {transform_indices = @transform_1, window_bounds = array<i64: 7, 128, 128>}, {transform_indices = @transform_2, window_bounds = array<i64: 1, 128>}, {transform_indices = @transform_3, window_bounds = array<i64: 1, 128>}, {transform_indices = @transform_4, window_bounds = array<i64: 1, 8, 128>}]} {
    %c0_i32 = arith.constant 0 : i32
    %0 = arith.cmpi eq, %arg2, %c0_i32 : i32
    %1 = arith.extui %0 : i1 to i32
    %c0_i32_0 = arith.constant 0 : i32
    %2 = arith.cmpi ne, %1, %c0_i32_0 : i32
    scf.if %2 {
      %cst_69 = arith.constant 0.000000e+00 : f32
      %62 = vector.broadcast %cst_69 : f32 to vector<8x128xf32>
      %c0_70 = arith.constant 0 : index
      %c0_71 = arith.constant 0 : index
      %63 = vector.load %arg8[%c0_70, %c0_71] : memref<8x128xf32, #tpu.memory_space<vmem>>, vector<8x128xf32>
      tpu.vector_store %arg8[%c0_70, %c0_71], %62 {strides = array<i32>} : memref<8x128xf32, #tpu.memory_space<vmem>>, vector<8x128xf32>,
    } else {
    }
    %c0 = arith.constant 0 : index
    %c0_1 = arith.constant 0 : index
    %3 = vector.load %arg8[%c0, %c0_1] : memref<8x128xf32, #tpu.memory_space<vmem>>, vector<8x128xf32>
    %c0_2 = arith.constant 0 : index
    %c0_3 = arith.constant 0 : index
    %c0_4 = arith.constant 0 : index
    %4 = vector.load %arg3[%c0_2, %c0_3, %c0_4] : memref<1x22x128xbf16, #tpu.memory_space<vmem>>, vector<1x8x128xbf16>
    %5 = vector.shape_cast %4 : vector<1x8x128xbf16> to vector<8x128xbf16>
    %c0_5 = arith.constant 0 : index
    %c0_6 = arith.constant 0 : index
    %c0_7 = arith.constant 0 : index
    %6 = vector.load %arg4[%c0_5, %c0_6, %c0_7] : memref<7x128x128xbf16, #tpu.memory_space<vmem>>, vector<1x128x128xbf16>
    %7 = vector.shape_cast %6 : vector<1x128x128xbf16> to vector<128x128xbf16>
    %cst = arith.constant dense<0.000000e+00> : vector<8x128xf32>
    %8 = tpu.matmul %5, %7, %cst {dimension_numbers = #tpu.dot_dimension_numbers<[1], [0], [0], [1], [0, 0, 1, 1], [], []>} : vector<8x128xbf16>, vector<128x128xbf16>, vector<8x128xf32> -> vector<8x128xf32>
    %9 = arith.addf %3, %8 : vector<8x128xf32>
    %c0_8 = arith.constant 0 : index
    %c0_9 = arith.constant 0 : index
    %10 = vector.load %arg8[%c0_8, %c0_9] : memref<8x128xf32, #tpu.memory_space<vmem>>, vector<8x128xf32>
    tpu.vector_store %arg8[%c0_8, %c0_9], %9 {strides = array<i32>} : memref<8x128xf32, #tpu.memory_space<vmem>>, vector<8x128xf32>,
    %c0_10 = arith.constant 0 : index
    %c0_11 = arith.constant 0 : index
    %11 = vector.load %arg8[%c0_10, %c0_11] : memref<8x128xf32, #tpu.memory_space<vmem>>, vector<8x128xf32>
    %c0_12 = arith.constant 0 : index
    %c11 = arith.constant 11 : index
    %c0_13 = arith.constant 0 : index
    %12 = vector.load %arg3[%c0_12, %c11, %c0_13] : memref<1x22x128xbf16, #tpu.memory_space<vmem>>, vector<1x8x128xbf16>
    %13 = vector.shape_cast %12 : vector<1x8x128xbf16> to vector<8x128xbf16>
    %c1 = arith.constant 1 : index
    %c0_14 = arith.constant 0 : index
    %c0_15 = arith.constant 0 : index
    %14 = vector.load %arg4[%c1, %c0_14, %c0_15] : memref<7x128x128xbf16, #tpu.memory_space<vmem>>, vector<1x128x128xbf16>
    %15 = vector.shape_cast %14 : vector<1x128x128xbf16> to vector<128x128xbf16>
    %cst_16 = arith.constant dense<0.000000e+00> : vector<8x128xf32>
    %16 = tpu.matmul %13, %15, %cst_16 {dimension_numbers = #tpu.dot_dimension_numbers<[1], [0], [0], [1], [0, 0, 1, 1], [], []>} : vector<8x128xbf16>, vector<128x128xbf16>, vector<8x128xf32> -> vector<8x128xf32>
    %17 = arith.addf %11, %16 : vector<8x128xf32>
    %c0_17 = arith.constant 0 : index
    %c0_18 = arith.constant 0 : index
    %18 = vector.load %arg8[%c0_17, %c0_18] : memref<8x128xf32, #tpu.memory_space<vmem>>, vector<8x128xf32>
    tpu.vector_store %arg8[%c0_17, %c0_18], %17 {strides = array<i32>} : memref<8x128xf32, #tpu.memory_space<vmem>>, vector<8x128xf32>,
    %c0_19 = arith.constant 0 : index
    %c0_20 = arith.constant 0 : index
    %19 = vector.load %arg8[%c0_19, %c0_20] : memref<8x128xf32, #tpu.memory_space<vmem>>, vector<8x128xf32>
    %c0_21 = arith.constant 0 : index
    %c1_22 = arith.constant 1 : index
    %c0_23 = arith.constant 0 : index
    %20 = vector.load %arg3[%c0_21, %c1_22, %c0_23] : memref<1x22x128xbf16, #tpu.memory_space<vmem>>, vector<1x8x128xbf16>
    %21 = vector.shape_cast %20 : vector<1x8x128xbf16> to vector<8x128xbf16>
    %c2 = arith.constant 2 : index
    %c0_24 = arith.constant 0 : index
    %c0_25 = arith.constant 0 : index
    %22 = vector.load %arg4[%c2, %c0_24, %c0_25] : memref<7x128x128xbf16, #tpu.memory_space<vmem>>, vector<1x128x128xbf16>
    %23 = vector.shape_cast %22 : vector<1x128x128xbf16> to vector<128x128xbf16>
    %cst_26 = arith.constant dense<0.000000e+00> : vector<8x128xf32>
    %24 = tpu.matmul %21, %23, %cst_26 {dimension_numbers = #tpu.dot_dimension_numbers<[1], [0], [0], [1], [0, 0, 1, 1], [], []>} : vector<8x128xbf16>, vector<128x128xbf16>, vector<8x128xf32> -> vector<8x128xf32>
    %25 = arith.addf %19, %24 : vector<8x128xf32>
    %c0_27 = arith.constant 0 : index
    %c0_28 = arith.constant 0 : index
    %26 = vector.load %arg8[%c0_27, %c0_28] : memref<8x128xf32, #tpu.memory_space<vmem>>, vector<8x128xf32>
    tpu.vector_store %arg8[%c0_27, %c0_28], %25 {strides = array<i32>} : memref<8x128xf32, #tpu.memory_space<vmem>>, vector<8x128xf32>,
    %c0_29 = arith.constant 0 : index
    %c0_30 = arith.constant 0 : index
    %27 = vector.load %arg8[%c0_29, %c0_30] : memref<8x128xf32, #tpu.memory_space<vmem>>, vector<8x128xf32>
    %c0_31 = arith.constant 0 : index
    %c12 = arith.constant 12 : index
    %c0_32 = arith.constant 0 : index
    %28 = vector.load %arg3[%c0_31, %c12, %c0_32] : memref<1x22x128xbf16, #tpu.memory_space<vmem>>, vector<1x8x128xbf16>
    %29 = vector.shape_cast %28 : vector<1x8x128xbf16> to vector<8x128xbf16>
    %c3 = arith.constant 3 : index
    %c0_33 = arith.constant 0 : index
    %c0_34 = arith.constant 0 : index
    %30 = vector.load %arg4[%c3, %c0_33, %c0_34] : memref<7x128x128xbf16, #tpu.memory_space<vmem>>, vector<1x128x128xbf16>
    %31 = vector.shape_cast %30 : vector<1x128x128xbf16> to vector<128x128xbf16>
    %cst_35 = arith.constant dense<0.000000e+00> : vector<8x128xf32>
    %32 = tpu.matmul %29, %31, %cst_35 {dimension_numbers = #tpu.dot_dimension_numbers<[1], [0], [0], [1], [0, 0, 1, 1], [], []>} : vector<8x128xbf16>, vector<128x128xbf16>, vector<8x128xf32> -> vector<8x128xf32>
    %33 = arith.addf %27, %32 : vector<8x128xf32>
    %c0_36 = arith.constant 0 : index
    %c0_37 = arith.constant 0 : index
    %34 = vector.load %arg8[%c0_36, %c0_37] : memref<8x128xf32, #tpu.memory_space<vmem>>, vector<8x128xf32>
    tpu.vector_store %arg8[%c0_36, %c0_37], %33 {strides = array<i32>} : memref<8x128xf32, #tpu.memory_space<vmem>>, vector<8x128xf32>,
    %c0_38 = arith.constant 0 : index
    %c0_39 = arith.constant 0 : index
    %35 = vector.load %arg8[%c0_38, %c0_39] : memref<8x128xf32, #tpu.memory_space<vmem>>, vector<8x128xf32>
    %c0_40 = arith.constant 0 : index
    %c2_41 = arith.constant 2 : index
    %c0_42 = arith.constant 0 : index
    %36 = vector.load %arg3[%c0_40, %c2_41, %c0_42] : memref<1x22x128xbf16, #tpu.memory_space<vmem>>, vector<1x8x128xbf16>
    %37 = vector.shape_cast %36 : vector<1x8x128xbf16> to vector<8x128xbf16>
    %c4 = arith.constant 4 : index
    %c0_43 = arith.constant 0 : index
    %c0_44 = arith.constant 0 : index
    %38 = vector.load %arg4[%c4, %c0_43, %c0_44] : memref<7x128x128xbf16, #tpu.memory_space<vmem>>, vector<1x128x128xbf16>
    %39 = vector.shape_cast %38 : vector<1x128x128xbf16> to vector<128x128xbf16>
    %cst_45 = arith.constant dense<0.000000e+00> : vector<8x128xf32>
    %40 = tpu.matmul %37, %39, %cst_45 {dimension_numbers = #tpu.dot_dimension_numbers<[1], [0], [0], [1], [0, 0, 1, 1], [], []>} : vector<8x128xbf16>, vector<128x128xbf16>, vector<8x128xf32> -> vector<8x128xf32>
    %41 = arith.addf %35, %40 : vector<8x128xf32>
    %c0_46 = arith.constant 0 : index
    %c0_47 = arith.constant 0 : index
    %42 = vector.load %arg8[%c0_46, %c0_47] : memref<8x128xf32, #tpu.memory_space<vmem>>, vector<8x128xf32>
    tpu.vector_store %arg8[%c0_46, %c0_47], %41 {strides = array<i32>} : memref<8x128xf32, #tpu.memory_space<vmem>>, vector<8x128xf32>,
    %c0_48 = arith.constant 0 : index
    %c0_49 = arith.constant 0 : index
    %43 = vector.load %arg8[%c0_48, %c0_49] : memref<8x128xf32, #tpu.memory_space<vmem>>, vector<8x128xf32>
    %c0_50 = arith.constant 0 : index
    %c13 = arith.constant 13 : index
    %c0_51 = arith.constant 0 : index
    %44 = vector.load %arg3[%c0_50, %c13, %c0_51] : memref<1x22x128xbf16, #tpu.memory_space<vmem>>, vector<1x8x128xbf16>
    %45 = vector.shape_cast %44 : vector<1x8x128xbf16> to vector<8x128xbf16>
    %c5 = arith.constant 5 : index
    %c0_52 = arith.constant 0 : index
    %c0_53 = arith.constant 0 : index
    %46 = vector.load %arg4[%c5, %c0_52, %c0_53] : memref<7x128x128xbf16, #tpu.memory_space<vmem>>, vector<1x128x128xbf16>
    %47 = vector.shape_cast %46 : vector<1x128x128xbf16> to vector<128x128xbf16>
    %cst_54 = arith.constant dense<0.000000e+00> : vector<8x128xf32>
    %48 = tpu.matmul %45, %47, %cst_54 {dimension_numbers = #tpu.dot_dimension_numbers<[1], [0], [0], [1], [0, 0, 1, 1], [], []>} : vector<8x128xbf16>, vector<128x128xbf16>, vector<8x128xf32> -> vector<8x128xf32>
    %49 = arith.addf %43, %48 : vector<8x128xf32>
    %c0_55 = arith.constant 0 : index
    %c0_56 = arith.constant 0 : index
    %50 = vector.load %arg8[%c0_55, %c0_56] : memref<8x128xf32, #tpu.memory_space<vmem>>, vector<8x128xf32>
    tpu.vector_store %arg8[%c0_55, %c0_56], %49 {strides = array<i32>} : memref<8x128xf32, #tpu.memory_space<vmem>>, vector<8x128xf32>,
    %c0_57 = arith.constant 0 : index
    %c0_58 = arith.constant 0 : index
    %51 = vector.load %arg8[%c0_57, %c0_58] : memref<8x128xf32, #tpu.memory_space<vmem>>, vector<8x128xf32>
    %c0_59 = arith.constant 0 : index
    %c3_60 = arith.constant 3 : index
    %c0_61 = arith.constant 0 : index
    %52 = vector.load %arg3[%c0_59, %c3_60, %c0_61] : memref<1x22x128xbf16, #tpu.memory_space<vmem>>, vector<1x8x128xbf16>
    %53 = vector.shape_cast %52 : vector<1x8x128xbf16> to vector<8x128xbf16>
    %c6 = arith.constant 6 : index
    %c0_62 = arith.constant 0 : index
    %c0_63 = arith.constant 0 : index
    %54 = vector.load %arg4[%c6, %c0_62, %c0_63] : memref<7x128x128xbf16, #tpu.memory_space<vmem>>, vector<1x128x128xbf16>
    %55 = vector.shape_cast %54 : vector<1x128x128xbf16> to vector<128x128xbf16>
    %cst_64 = arith.constant dense<0.000000e+00> : vector<8x128xf32>
    %56 = tpu.matmul %53, %55, %cst_64 {dimension_numbers = #tpu.dot_dimension_numbers<[1], [0], [0], [1], [0, 0, 1, 1], [], []>} : vector<8x128xbf16>, vector<128x128xbf16>, vector<8x128xf32> -> vector<8x128xf32>
    %57 = arith.addf %51, %56 : vector<8x128xf32>
    %c0_65 = arith.constant 0 : index
    %c0_66 = arith.constant 0 : index
    %58 = vector.load %arg8[%c0_65, %c0_66] : memref<8x128xf32, #tpu.memory_space<vmem>>, vector<8x128xf32>
    tpu.vector_store %arg8[%c0_65, %c0_66], %57 {strides = array<i32>} : memref<8x128xf32, #tpu.memory_space<vmem>>, vector<8x128xf32>,
    %c0_i32_67 = arith.constant 0 : i32
    %59 = arith.cmpi eq, %arg2, %c0_i32_67 : i32
    %60 = arith.extui %59 : i1 to i32
    %c0_i32_68 = arith.constant 0 : i32
    %61 = arith.cmpi ne, %60, %c0_i32_68 : i32
    scf.if %61 {
      %c0_69 = arith.constant 0 : index
      %c0_70 = arith.constant 0 : index
      %62 = vector.load %arg8[%c0_69, %c0_70] : memref<8x128xf32, #tpu.memory_space<vmem>>, vector<8x128xf32>
      %c0_71 = arith.constant 0 : index
      %c0_72 = arith.constant 0 : index
      %63 = vector.load %arg5[%c0_71, %c0_72] : memref<1x128xf32, #tpu.memory_space<vmem>>, vector<1x128xf32>
      %64 = vector.broadcast %63 : vector<1x128xf32> to vector<8x128xf32>
      %65 = arith.mulf %62, %64 : vector<8x128xf32>
      %c0_73 = arith.constant 0 : index
      %c0_74 = arith.constant 0 : index
      %66 = vector.load %arg6[%c0_73, %c0_74] : memref<1x128xf32, #tpu.memory_space<vmem>>, vector<1x128xf32>
      %67 = vector.broadcast %66 : vector<1x128xf32> to vector<8x128xf32>
      %68 = arith.addf %65, %67 : vector<8x128xf32>
      %cst_75 = arith.constant 0.000000e+00 : f32
      %69 = vector.broadcast %cst_75 : f32 to vector<8x128xf32>
      %70 = arith.maximumf %68, %69 : vector<8x128xf32>
      %71 = arith.truncf %70 : vector<8x128xf32> to vector<8x128xbf16>
      %c0_76 = arith.constant 0 : index
      %c0_77 = arith.constant 0 : index
      %c0_78 = arith.constant 0 : index
      %72 = vector.load %arg7[%c0_76, %c0_77, %c0_78] : memref<1x8x128xbf16, #tpu.memory_space<vmem>>, vector<1x8x128xbf16>
      %73 = vector.shape_cast %72 : vector<1x8x128xbf16> to vector<8x128xbf16>
      %74 = vector.shape_cast %71 : vector<8x128xbf16> to vector<1x8x128xbf16>
      tpu.vector_store %arg7[%c0_76, %c0_77, %c0_78], %74 {strides = array<i32>} : memref<1x8x128xbf16, #tpu.memory_space<vmem>>, vector<1x8x128xbf16>,
    } else {
    }
    return
  }
  func.func @transform_0(%arg0: i32, %arg1: i32, %arg2: i32) -> (i32, i32, i32) {
    %c0_i32 = arith.constant 0 : i32
    %c0_i32_0 = arith.constant 0 : i32
    return %arg0, %c0_i32, %arg2 : i32, i32, i32
  }
  func.func @transform_1(%arg0: i32, %arg1: i32, %arg2: i32) -> (i32, i32, i32) {
    %c0_i32 = arith.constant 0 : i32
    %c0_i32_0 = arith.constant 0 : i32
    return %c0_i32, %arg2, %arg1 : i32, i32, i32
  }
  func.func @transform_2(%arg0: i32, %arg1: i32, %arg2: i32) -> (i32, i32) {
    %c0_i32 = arith.constant 0 : i32
    %c0_i32_0 = arith.constant 0 : i32
    return %c0_i32, %arg1 : i32, i32
  }
  func.func @transform_3(%arg0: i32, %arg1: i32, %arg2: i32) -> (i32, i32) {
    %c0_i32 = arith.constant 0 : i32
    %c0_i32_0 = arith.constant 0 : i32
    return %c0_i32, %arg1 : i32, i32
  }
  func.func @transform_4(%arg0: i32, %arg1: i32, %arg2: i32) -> (i32, i32, i32) {
    %c0_i32 = arith.constant 0 : i32
    %c0_i32_0 = arith.constant 0 : i32
    return %arg0, %c0_i32, %arg1 : i32, i32, i32
  }
}

</mosaic_0001>

<bundles_post_ra>
// kernel: tpu_custom_call.1
= control target key start
LH: loop header
LB: loop body
LE: loop exit
PB: predicated region body
PF: predicated region fallthrough
CT: control target
= control target key end

     0   :  { %9 = vsyncpa [#allocation4], 0  ;;  %s1748_s0 = inlined_call_operand.vmem [shape: bf16[2,22,128], index: 0, kind: input, shape index: {}]   ;;  %s1749_s1 = inlined_call_operand.hbm [shape: bf16[7,128,128], index: 1, kind: input, shape index: {}]   ;;  %s1750_s2 = inlined_call_operand.vmem [shape: f32[1,128], index: 2, kind: input, shape index: {}]   ;;  %s1751_s3 = inlined_call_operand.vmem [shape: f32[1,128], index: 3, kind: input, shape index: {}]   ;;  %s1752_s4 = inlined_call_operand.hbm [shape: bf16[2,8,128], index: 4, kind: output, shape index: {}]  }
   0x1   :  { %10 = vsyncpa [#allocation5], 0 }
   0x2   :  { %12 = vsyncpa [#allocation5 + $0x1], 0  ;;  %s1627_s15 = smov 0   ;;  %s1629_s16 = smov 0  }
   0x3   :  { %s1631_s17 = smov 0   ;;  %s1633_s18 = smov 0  }
   0x4   :  { %s1635_s19 = smov 0   ;;  %s1637_s20 = smov 0  }
   0x5 LB: > { %s1089_s21 = sadd.s32 4294967295, %s1597_s20   ;;  %s1090_s22 = sadd.s32 4294967294, %s1597_s20   ;;  %s1597_s20 = sphi %s1637_s20, %s18_s20   ;;  %s1593_s19 = sphi %s1635_s19, %s1759_s19   ;;  %s1589_s18 = sphi %s1633_s18, %s1758_s18   ;;  %s1585_s17 = sphi %s1631_s17, %s1757_s17   ;;  %s1581_s16 = sphi %s1629_s16, %s1756_s16   ;;  %s1577_s15 = sphi %s1627_s15, %s1755_s15  }
   0x6   : > { %s37_s23 = sadd.s32 1, %s1593_s19  ;;  %s154_s24 = sadd.s32 1, %s1585_s17 }
   0x7   : > { %p39_p0 = scmp.ge.s32.totalorder %s37_s23, 2  ;;  %p164_p1 = scmp.ne.s32.totalorder %s1585_s17, %s1581_s16 }
   0x8   : > { %p165_p2 = scmp.eq.s32.totalorder %s1089_s21, 1  ;;  %p170_p3 = scmp.ne.s32.totalorder %s1581_s16, %s1577_s15 }
   0x9   : > { %s1761_s23 = smov (%p39_p0, %s37_s23), 0  ;;  %p171_p5 = scmp.eq.s32.totalorder %s1090_s22, 1 }
   0xa   : > { %p1667_p4 = por %p165_p2, %p164_p1  ;;  %s149_s26 = ssub.s32 %s1593_s19, %s1761_s23 }
   0xb   : > { %p1091_p6 = scmp.ge.s32.totalorder %s1597_s20, 1  ;;  %p152_p7 = scmp.eq.s32.totalorder %s149_s26, 0 }
   0xc   : > { %p1674_p8 = por %p171_p5, %p170_p3  ;;  %p178_p9 = scmp.lt.s32.totalorder %s1597_s20, 3 }
   0xd   : > { %s1680_s28 = scalar_select %p152_p7, %s1585_s17, %s154_s24  }
   0xe   : > { %p179_p10 = pnand %p1091_p6, %p178_p9  ;;  %p1429_p11 = scmp.eq.s32.totalorder %s1089_s21, 0 }
   0xf   : > { %s193_s5 = sshll.u32 %s1749_s1, 4  ;;  %s1599_s6 = smov [#allocation3]   ;;  %s194_s5 = int_to_ptr.hbm [resolvable:$true] %s193_s5 }
  0x10   : > { %p1421_p12 = pneg %p179_p10  ;;  %s195_s7 = sshll.u32 %s1599_s6, 4  ;;  %s196_s7 = int_to_ptr.vmem [resolvable:$true] %s195_s7 }
  0x11   : > { %s1600_s8 = smov 64   ;;  %s1601_s9 = smov 4  }
  0x12   : > { %p1422_p13 = pnand %p1429_p11, %p1421_p12  ;;  %234 = sbr.rel (%p179_p10) target bundleno = 235 (0xeb), region = 36 }
  0x14   : > { %1424 = dma.hbm_to_vmem [thread:$0]  (!%p1422_p13), %s194_s5, 7168, %s196_s7, [#allocation4], %s1600_s8, %s1600_s8, %s1601_s9  }
  0x17   : > { %1568 = dma.done.wait (%p1429_p11), [#allocation4], 7168  }
  0x18   : > { %1570 = vsyncadd (%p1429_p11), [#allocation4], 4294960128  ;;  %p270_p0 = scmp.lt.s32.totalorder %s1589_s18, 1  ;;  %v1359_v0 = vld [vmem:[#allocation3 + $0x38] sm:$0xff]  ;;  %v1358_v3 = vld [vmem:[#allocation3 + $0x30] sm:$0xff]  ;;  %s267_s21 = sand.u32 1, %s1581_s16  }
  0x19   : > { %v1368_v1 = vld [vmem:[#allocation3 + $0x78] sm:$0xff]  ;;  %356 = vmatpush.bf16.msra.mxu0 %v1359_v0  ;;  %v1367_v4 = vld [vmem:[#allocation3 + $0x70] sm:$0xff]  ;;  %v1357_v7 = vld [vmem:[#allocation3 + $0x28] sm:$0xff]  ;;  %s1098_s26 = sshll.u32 %s267_s21, 2  ;;  %s1349_s29 = sshll.u32 %s1589_s18, 2 }
  0x1a   : > { %v1377_v2 = vld [vmem:[#allocation3 + $0xb8] sm:$0xff]  ;;  %453 = vmatpush.bf16.msra.mxu1 %v1368_v1  ;;  %v1376_v5 = vld [vmem:[#allocation3 + $0xb0] sm:$0xff]  ;;  %s271_s10 = scalar_select %p270_p0, %s1589_s18, 1  ;;  %v1366_v8 = vld [vmem:[#allocation3 + $0x68] sm:$0xff] }
  0x1b   : > { %549 = vmatpush.bf16.msra.mxu2 %v1377_v2  ;;  %v1386_v6 = vld [vmem:[#allocation3 + $0xf8] sm:$0xff]  ;;  %v1375_v9 = vld [vmem:[#allocation3 + $0xa8] sm:$0xff]  ;;  %v1385_v10 = vld [vmem:[#allocation3 + $0xf0] sm:$0xff]  ;;  %s967_s8 = scalar_lea.hbm %s1752_s4, %s1349_s29  ;;  %s269_s9 = scalar_lea.vmem [#allocation6], %s1098_s26 }
  0x1c   : > { %639 = vmatpush.bf16.msra.mxu3 %v1386_v6  ;;  %s1414_s11 = smul.u32 12, %s271_s10  ;;  %v1356_v11 = vld [vmem:[#allocation3 + $0x20] sm:$0xff]  ;;  %v1384_v14 = vld [vmem:[#allocation3 + $0xe8] sm:$0xff]  ;;  %v1355_v15 = vld [vmem:[#allocation3 + $0x18] sm:$0xff]  ;;  %s969_s10 = sshll.u32 %s269_s9, 4  ;;  %s970_s10 = int_to_ptr.vmem [resolvable:$true] %s969_s10 }
  0x1d   : > { %357 = vmatpush.bf16.msra.mxu0 %v1358_v3  ;;  %v1365_v12 = vld [vmem:[#allocation3 + $0x60] sm:$0xff]  ;;  %v1364_v16 = vld [vmem:[#allocation3 + $0x58] sm:$0xff]  ;;  %v1354_v23 = vld [vmem:[#allocation3 + $0x10] sm:$0xff]  ;;  %s956_s18 = scalar_lea.sflag [#allocation5], %s267_s21  ;;  %s1535_s24 = scalar_lea.hbm %s1752_s4, 8 }
  0x1e   : > { %454 = vmatpush.bf16.msra.mxu1 %v1367_v4  ;;  %v1374_v13 = vld [vmem:[#allocation3 + $0xa0] sm:$0xff]  ;;  %s1690_s14 = scalar_lea.vmem %s1748_s0, %s1414_s11  ;;  %v1373_v17 = vld [vmem:[#allocation3 + $0x98] sm:$0xff]  ;;  %v1363_v24 = vld [vmem:[#allocation3 + $0x50] sm:$0xff]  ;;  %s971_s11 = sshll.u32 %s967_s8, 4  ;;  %s972_s11 = int_to_ptr.hbm [resolvable:$true] %s971_s11 }
  0x1f   : > { %550 = vmatpush.bf16.msra.mxu2 %v1376_v5  ;;  %v1383_v18 = vld [vmem:[#allocation3 + $0xe0] sm:$0xff]  ;;  %v1360_v22 = vld [vmem:[%s1690_s14 + $0x4] sm:$0x30]  ;;  %v1372_v27 = vld [vmem:[#allocation3 + $0x90] sm:$0xff]  ;;  %s1529_s12 = sshra.s32 %s972_s11, 4  ;;  %s1530_s12 = int_to_ptr.hbm [resolvable:$true] %s1529_s12 }
  0x20   : > { %640 = vmatpush.bf16.msra.mxu3 %v1385_v10  ;;  %v1170_v19 = vld [vmem:[%s1690_s14] sm:$0xf]  ;;  %v1369_v20 = vld [vmem:[%s1690_s14] sm:$0x10]  ;;  %v1134_v21 = vld [vmem:[%s1690_s14 + $0x4] sm:$0xe]  ;;  %p1536_p5 = scmp.lt.s32.totalorder %s1530_s12, %s1752_s4 }
  0x21   : > { %358 = vmatpush.bf16.msra.mxu0 %v1357_v7  ;;  %v1171_v25 = vor.u32 %v1369_v20, %v1170_v19  ;;  %v1135_v26 = vor.u32 %v1360_v22, %v1134_v21  ;;  %v1382_v28 = vld [vmem:[#allocation3 + $0xd8] sm:$0xff]  ;;  %v1353_v29 = vld [vmem:[#allocation3 + $0x8] sm:$0xff]  ;;  %v1381_v35 = vld [vmem:[#allocation3 + $0xd0] sm:$0xff]  ;;  %s1531_s13 = scalar_lea.hbm %s1530_s12, 4 }
  0x22   : > { %455 = vmatpush.bf16.msra.mxu1 %v1366_v8  ;;  %v1362_v30 = vld [vmem:[#allocation3 + $0x48] sm:$0xff]  ;;  %v1352_v36 = vld [vmem:[#allocation3] sm:$0xff]  ;;  %v1395_v43 = vld [vmem:[#allocation3 + $0x138] sm:$0xff]  ;;  %p1532_p1 = scmp.ne.s32.totalorder %s1530_s12, %s1531_s13  ;;  %p1537_p6 = scmp.lt.s32.totalorder %s1535_s24, %s1531_s13 }
  0x23   : > { %551 = vmatpush.bf16.msra.mxu2 %v1375_v9  ;;  %v496_v31 = vshll.u32 %v1171_v25, 16  ;;  %v397_v32 = vshrl.u32 %v1135_v26, 16  ;;  %v400_v33 = vshll.u32 %v1135_v26, 16  ;;  %v1371_v34 = vld [vmem:[#allocation3 + $0x88] sm:$0xff]  ;;  %v1361_v37 = vld [vmem:[#allocation3 + $0x40] sm:$0xff]  ;;  %v494_v38 = vshrl.u32 %v1171_v25, 16 }
  0x24   : > { %641 = vmatpush.bf16.msra.mxu3 %v1384_v14  ;;  %v1370_v42 = vld [vmem:[#allocation3 + $0x80] sm:$0xff]  ;;  %v1404_v44 = vld [vmem:[#allocation3 + $0x178] sm:$0xff]  ;;  %v1380_v46 = vld [vmem:[#allocation3 + $0xc8] sm:$0xff]  ;;  %p1533_p2 = pnand %p1532_p1, %p1667_p4  ;;  %p1538_p7 = por %p1537_p6, %p1536_p5 }
  0x25   : > { %359 = vmatpush.bf16.msra.mxu0 %v1356_v11  ;;  %v498_v39 = vrot.slane %v496_v31, 1  ;;  %v399_v40 = vrot.slane %v397_v32, 1  ;;  %v402_v41 = vrot.slane %v400_v33, 2  ;;  %v1413_v45 = vld [vmem:[#allocation3 + $0x1b8] sm:$0xff]  ;;  %v291_v48 = vld [vmem:[%s1690_s14] sm:$0xf] }
  0x26   : > { %456 = vmatpush.bf16.msra.mxu1 %v1365_v12  ;;  %v1206_v50 = vld [vmem:[%s1690_s14 + $0x4] sm:$0xc]  ;;  %v1378_v51 = vld [vmem:[%s1690_s14 + $0x4] sm:$0x30]  ;;  %v1394_v52 = vld [vmem:[#allocation3 + $0x130] sm:$0xff]  ;;  %p1534_p3 = pneg %p1533_p2 }
  0x27   : > { %552 = vmatpush.bf16.msra.mxu2 %v1374_v13  ;;  %v499_v47 = vor.u32 %v498_v39, %v494_v38  ;;  %v403_v49 = vor.u32 %v402_v41, %v399_v40  ;;  %v1403_v53 = vld [vmem:[#allocation3 + $0x170] sm:$0xff]  ;;  %v1379_v55 = vld [vmem:[#allocation3 + $0xc0] sm:$0xff]  ;;  %v1207_v56 = vor.u32 %v1378_v51, %v1206_v50  ;;  %v1393_v57 = vld [vmem:[#allocation3 + $0x128] sm:$0xff] }
  0x28   : > { %642 = vmatpush.bf16.msra.mxu3 %v1383_v18  ;;  %v1412_v54 = vld [vmem:[#allocation3 + $0x1b0] sm:$0xff]  ;;  %v1402_v58 = vld [vmem:[#allocation3 + $0x168] sm:$0xff]  ;;  %v1392_v61 = vld [vmem:[#allocation3 + $0x120] sm:$0xff]  ;;  %p1539_p9 = pnand %p1538_p7, %p1534_p3 }
  0x29   : > { %360 = vmatpush.bf16.msra.mxu0 %v1355_v15  ;;  %v1411_v59 = vld [vmem:[#allocation3 + $0x1a8] sm:$0xff]  ;;  %v589_v60 = vrot.slane %v1207_v56, 2  ;;  %v1401_v62 = vld [vmem:[#allocation3 + $0x160] sm:$0xff]  ;;  %v1391_v0 = vld [vmem:[#allocation3 + $0x118] sm:$0xff] }
  0x2a   : > { %457 = vmatpush.bf16.msra.mxu1 %v1364_v16  ;;  %v1410_v63 = vld [vmem:[#allocation3 + $0x1a0] sm:$0xff]  ;;  %v1400_v1 = vld [vmem:[#allocation3 + $0x158] sm:$0xff]  ;;  %v1396_v4 = vld [vmem:[%s1690_s14 + $0x4] sm:$0x70] }
  0x2b   : > { %553 = vmatpush.bf16.msra.mxu2 %v1373_v17  ;;  %v1409_v2 = vld [vmem:[#allocation3 + $0x198] sm:$0xff]  ;;  %v1278_v3 = vld [vmem:[%s1690_s14 + $0x4] sm:$0xc]  ;;  %v1314_v5 = vld [vmem:[%s1690_s14] sm:$0xe] }
  0x2c   : > { %643 = vmatpush.bf16.msra.mxu3 %v1382_v28  ;;  %v1405_v6 = vld [vmem:[%s1690_s14] sm:$0x30]  ;;  %v1390_v7 = vld [vmem:[#allocation3 + $0x110] sm:$0xff]  ;;  %v1279_v8 = vor.u32 %v1396_v4, %v1278_v3  ;;  %v1389_v12 = vld [vmem:[#allocation3 + $0x108] sm:$0xff] }
  0x2d   : > { %361 = vmatpush.bf16.msra.mxu0 %v1354_v23  ;;  %v1315_v9 = vor.u32 %v1405_v6, %v1314_v5  ;;  %v1399_v10 = vld [vmem:[#allocation3 + $0x150] sm:$0xff]  ;;  %v1242_v13 = vld [vmem:[%s1690_s14] sm:$0xe]  ;;  %v1387_v14 = vld [vmem:[%s1690_s14] sm:$0x10] }
  0x2e   : > { %458 = vmatpush.bf16.msra.mxu1 %v1363_v24  ;;  %v1408_v11 = vld [vmem:[#allocation3 + $0x190] sm:$0xff]  ;;  %v770_v15 = vshrl.u32 %v1279_v8, 16  ;;  %v773_v16 = vshll.u32 %v1279_v8, 16  ;;  %v1398_v19 = vld [vmem:[#allocation3 + $0x148] sm:$0xff]  ;;  %v1243_v21 = vor.u32 %v1387_v14, %v1242_v13  ;;  %v1388_v22 = vld [vmem:[#allocation3 + $0x100] sm:$0xff] }
  0x2f   : > { %554 = vmatpush.bf16.msra.mxu2 %v1372_v27  ;;  %v867_v17 = vshrl.u32 %v1315_v9, 16  ;;  %v870_v18 = vshll.u32 %v1315_v9, 16  ;;  %v1407_v20 = vld [vmem:[#allocation3 + $0x188] sm:$0xff]  ;;  %v1397_v27 = vld [vmem:[#allocation3 + $0x140] sm:$0xff] }
  0x30   : > { %644 = vmatpush.bf16.msra.mxu3 %v1381_v35  ;;  %v772_v23 = vrot.slane %v770_v15, 2  ;;  %v775_v24 = vrot.slane %v773_v16, 3  ;;  %v1406_v28 = vld [vmem:[#allocation3 + $0x180] sm:$0xff] }
  0x31   : > { %362 = vmatpush.bf16.msra.mxu0 %v1353_v29  ;;  %v869_v25 = vrot.slane %v867_v17, 1  ;;  %v872_v26 = vrot.slane %v870_v18, 2  ;;  %v679_v29 = vrot.slane %v1243_v21, 1  ;;  %v1484_v50 = vld [vmem:[%s1751_s3] ss:$0 sm:$0xff] }
  0x32   : > { %459 = vmatpush.bf16.msra.mxu1 %v1362_v30  ;;  %v776_v30 = vor.u32 %v775_v24, %v772_v23 }
  0x33   : > { %555 = vmatpush.bf16.msra.mxu2 %v1371_v34  ;;  %v873_v31 = vor.u32 %v872_v26, %v869_v25 }
  0x34   : > { %645 = vmatpush.bf16.msra.mxu3 %v1380_v46 }
  0x35   : > { %363 = vmatpush.bf16.msra.mxu0 %v1352_v36 }
  0x36   : > { %460 = vmatpush.bf16.msra.mxu1 %v1361_v37 }
  0x37   : > { %556 = vmatpush.bf16.msra.mxu2 %v1370_v42 }
  0x38   : > { %364 = vmatmul.bf16.vlgmr.msra.gmra.mxu0 %v291_v48  ;;  %646 = vmatpush.bf16.msra.mxu3 %v1379_v55 }
  0x39   : > { %729 = vmatpush.bf16.msrb.mxu0 %v1395_v43  ;;  %461 = vmatmul.bf16.vlgmr.msra.gmra.mxu1 %v403_v49 }
  0x3a   : > { %826 = vmatpush.bf16.msrb.mxu1 %v1404_v44  ;;  %557 = vmatmul.bf16.vlgmr.msra.gmra.mxu2 %v499_v47  ;;  %v1483_v47 = vld [vmem:[%s1750_s2] ss:$0 sm:$0xff] }
  0x3b   : > { %923 = vmatpush.bf16.msrb.mxu2 %v1413_v45  ;;  %647 = vmatmul.bf16.vlgmr.msra.gmra.mxu3 %v589_v60 }
  0x3d   : > { %730 = vmatpush.bf16.msrb.mxu0 %v1394_v52 }
  0x3e   : > { %827 = vmatpush.bf16.msrb.mxu1 %v1403_v53 }
  0x3f   : > { %924 = vmatpush.bf16.msrb.mxu2 %v1412_v54 }
  0x41   : > { %731 = vmatpush.bf16.msrb.mxu0 %v1393_v57 }
  0x42   : > { %828 = vmatpush.bf16.msrb.mxu1 %v1402_v58 }
  0x43   : > { %925 = vmatpush.bf16.msrb.mxu2 %v1411_v59 }
  0x45   : > { %732 = vmatpush.bf16.msrb.mxu0 %v1392_v61 }
  0x46   : > { %829 = vmatpush.bf16.msrb.mxu1 %v1401_v62 }
  0x47   : > { %926 = vmatpush.bf16.msrb.mxu2 %v1410_v63 }
  0x49   : > { %733 = vmatpush.bf16.msrb.mxu0 %v1391_v0 }
  0x4a   : > { %830 = vmatpush.bf16.msrb.mxu1 %v1400_v1 }
  0x4b   : > { %927 = vmatpush.bf16.msrb.mxu2 %v1409_v2 }
  0x4d   : > { %734 = vmatpush.bf16.msrb.mxu0 %v1390_v7 }
  0x4e   : > { %831 = vmatpush.bf16.msrb.mxu1 %v1399_v10 }
  0x4f   : > { %928 = vmatpush.bf16.msrb.mxu2 %v1408_v11 }
  0x51   : > { %735 = vmatpush.bf16.msrb.mxu0 %v1389_v12 }
  0x52   : > { %832 = vmatpush.bf16.msrb.mxu1 %v1398_v19 }
  0x53   : > { %929 = vmatpush.bf16.msrb.mxu2 %v1407_v20 }
  0x55   : > { %736 = vmatpush.bf16.msrb.mxu0 %v1388_v22 }
  0x56   : > { %833 = vmatpush.bf16.msrb.mxu1 %v1397_v27 }
  0x57   : > { %930 = vmatpush.bf16.msrb.mxu2 %v1406_v28 }
  0x58   : > { %737 = vmatmul.bf16.vlgmr.msrb.gmra.mxu0 %v679_v29 }
  0x59   : > { %834 = vmatmul.bf16.vlgmr.msrb.gmra.mxu1 %v776_v30 }
  0x5a   : > { %931 = vmatmul.bf16.vlgmr.msrb.gmra.mxu2 %v873_v31 }
  0xb5   : > { %v365_v32 = vpop.f32.mrf.mxu0 }
  0xb6   : > { %v462_v33 = vpop.f32.mrf.mxu1 }
  0xb7   : > { %v466_v39 = vadd.f32 %v462_v33, %v365_v32 }
  0xbd   : > { %v558_v34 = vpop.f32.mrf.mxu2  ;;  %v367_v35 = vpop.f32.mrf.mxu0 }
  0xbe   : > { %v464_v36 = vpop.f32.mrf.mxu1  ;;  %v648_v37 = vpop.f32.mrf.mxu3  ;;  %v562_v41 = vadd.f32 %v558_v34, %v466_v39 }
  0xc0   : > { %v652_v42 = vadd.f32 %v648_v37, %v562_v41 }
  0xc5   : > { %v560_v38 = vpop.f32.mrf.mxu2 }
  0xc6   : > { %v650_v40 = vpop.f32.mrf.mxu3 }
  0xd5   : > { %v738_v43 = vpop.f32.mrf.mxu0 }
  0xd6   : > { %v835_v44 = vpop.f32.mrf.mxu1  ;;  %v742_v45 = vadd.f32 %v738_v43, %v652_v42 }
  0xd8   : > { %v839_v46 = vadd.f32 %v835_v44, %v742_v45 }
  0xdd   : > { %v932_v48 = vpop.f32.mrf.mxu2  ;;  %v740_v51 = vpop.f32.mrf.mxu0 }
  0xde   : > { %v936_v49 = vadd.f32 %v932_v48, %v839_v46  ;;  %v837_v52 = vpop.f32.mrf.mxu1 }
  0xe0   : > { %v946_v53 = vmul.f32 %v1483_v47, %v936_v49 }
  0xe2   : > { %v951_v54 = vadd.f32 %v1484_v50, %v946_v53 }
  0xe4   : > { %v952_v55 = vmax.f32 %v951_v54, 0.0 }
  0xe5   : > { %v934_v56 = vpop.f32.mrf.mxu2 }
  0xe6   : > { %v953_v57 = vpack.c.bf16 %v952_v55, %v952_v55 }
  0xe8   : > { %954 = vst [vmem:[%s269_s9] sm:$0xf] %v953_v57 }
  0xe9   : > { %1542 = shalt.err (!%p1539_p9)
}
  0xea   : > { %1419 = dma.vmem_to_hbm [thread:$0]  (%p1667_p4), %s970_s10, 64, %s972_s11, %s956_s18  }
  0xeb PF: > { %p1431_p10 = scmp.ge.s32.totalorder %s1597_s20, 2  ;;  %s983_s21 = sand.u32 1, %s1577_s15  }
  0xec   : > { %s984_s30 = scalar_lea.sflag [#allocation5], %s983_s21 }
  0xed   : > { %p1426_p11 = pnand %p1431_p10, %p1674_p8 }
  0xef   : > { %p1427_p12 = pneg %p1426_p11 }
  0xf1   : > { %1572 = dma.done.wait (%p1427_p12), %s984_s30, 64  }
  0xf2   : > { %1574 = vsyncadd (%p1427_p12), %s984_s30, 4294967232  ;;  %s18_s20 = sadd.s32 1, %s1597_s20   ;;  %s1755_s15 = smov %s1581_s16 }
  0xf3   : > { %p15_p13 = scmp.ge.s32.totalorder %s18_s20, 4   ;;  %s1756_s16 = smov %s1585_s17 }
  0xf4   : > { %s1757_s17 = smov %s1680_s28  ;;  %s1758_s18 = smov %s1593_s19 }
  0xf5   : > { %s1759_s19 = smov %s1761_s23  ;;  %17 = sbr.rel (!%p15_p13) target bundleno = 5 (0x5), region = 97 }
  0xfa   :  { %990 = vsyncpa [#allocation4], 1 }
  0xfb   :  { %992 = vsyncpa [#allocation4 + $0x1], 1 }
  0xfc   :  { %993 = vsyncpa [#allocation5], 1 }
  0xfd   :  { %995 = vsyncpa [#allocation5 + $0x1], 1 }

</bundles_post_ra>
